<compile_context>
chip_gen: v6e
topology: v6e:2x2x1
jax: 0.10.0
libtpu: 0.0.40
codegen_flags: <defaults>
</compile_context>

<pallas_src>
import functools

import jax
import jax.numpy as jnp
import numpy as np
from jax import lax
from jax.experimental import pallas as pl
from jax.experimental.pallas import tpu as pltpu


# ----------------------------------------------------------------------------
# Helpers
# ----------------------------------------------------------------------------
def _round_up(a, m):
    return (a + m - 1) // m * m


def _vmem_capacity_bytes():
    """Physical VMEM per TensorCore (128 MiB v5e/v6e, 64 MiB v7x)."""
    try:
        info = pltpu.get_tpu_info()
        for attr in ("vmem_capacity_bytes", "vmem_bytes", "vmem_size_bytes"):
            v = getattr(info, attr, None)
            if v:
                return int(v)
    except Exception:
        pass
    return 64 * 1024 * 1024            # conservative fallback (v7x-sized)


def _act_pad_rows(c, itemsize):
    """Sublane-padded channel count for a (C, n) tile of the given dtype."""
    packing = max(1, 4 // max(1, itemsize))
    return _round_up(c, 8 * packing)


def _fused_fits(N, C, itemsize, vmem_cap):
    """Can one whole per-batch volume (double-buffered) live in VMEM?"""
    n128 = _round_up(N, 128)
    pad_act = _act_pad_rows(C, itemsize)
    pad_f32 = _round_up(C, 8)
    needed = (2 * 3 * pad_act * n128 * itemsize   # x, skip, out blocks (x2 buffers)
              + pad_f32 * n128 * 4                # f32 reduce-conv result
              + 8 * n128 * 4                      # f32 gate row (padded sublanes)
              + 3 * pad_f32 * n128 * 4            # cast / temporary slack
              + (1 << 20))                        # fixed slack
    return needed <= int(vmem_cap * 0.70)


def _choose_tile(N, C, itemsize, vmem_cap, *, max_tn=32768):
    """Largest lane tile for the two-pass path under a generation-aware budget."""
    pad_act = _act_pad_rows(C, itemsize)
    pad_f32 = _round_up(C + 1, 8)
    per_lane = (2 * 3 * pad_act * itemsize        # x, skip, out blocks (x2 buffers)
                + pad_f32 * 4                     # f32 (C+1, tn) intermediate
                + 8 * 4                           # f32 gate row
                + pad_act * itemsize)             # temporaries / cast slack
    budget = int(vmem_cap * 0.55)
    cap_lanes = budget // per_lane
    if cap_lanes >= 512:
        cap_lanes = cap_lanes // 512 * 512
    else:
        cap_lanes = max(128, cap_lanes // 128 * 128)
    tn = min(max_tn, cap_lanes)
    full = _round_up(N, 128)
    if full <= tn:                                # whole volume in one lane tile
        tn = full
    n_tiles = pl.cdiv(N, tn)
    return tn, n_tiles


# ----------------------------------------------------------------------------
# Fully fused kernel: one grid step per batch, whole (C, N) volume in VMEM.
# pool -> attention -> attention-folded reduce conv -> spatial gate -> out.
# ----------------------------------------------------------------------------
def _dff_fused_kernel(x_ref, s_ref, wax_ref, was_ref, wrx_ref, wrs_ref,
                      w1_ref, w2_ref, b_ref, o_ref, *, dim, inv_n):
    f32 = jnp.float32
    xt = x_ref[0]                                     # (C, N) native dtype
    st = s_ref[0]

    # Global average pool (block == full array, so no padded-lane correction).
    mx = jnp.sum(xt.astype(f32), axis=-1, keepdims=True) * inv_n   # (C, 1)
    ms = jnp.sum(st.astype(f32), axis=-1, keepdims=True) * inv_n   # (C, 1)

    # Channel attention: sigmoid(W_atten @ [mx; ms]).
    pre = jnp.dot(wax_ref[...], mx, preferred_element_type=f32)
    pre = pre + jnp.dot(was_ref[...], ms, preferred_element_type=f32)
    att = jax.nn.sigmoid(pre)                         # (2C, 1), f32

    # Fold the attention into the reduce-conv weights: W_eff = W_redu @ diag(att)
    # (kept in f32; only cast to the activation dtype for the big MXU dots).
    rows = lax.broadcasted_iota(jnp.int32, (dim, dim), 0)
    cols = lax.broadcasted_iota(jnp.int32, (dim, dim), 1)
    eye = (rows == cols).astype(f32)
    dax = eye * att[:dim]                             # diag(att_x)
    das = eye * att[dim:]                             # diag(att_skip)
    wex = jnp.dot(wrx_ref[...], dax, preferred_element_type=f32).astype(xt.dtype)
    wes = jnp.dot(wrs_ref[...], das, preferred_element_type=f32).astype(xt.dtype)

    # Reduce conv (attention folded in) + spatial gate on the resident tiles.
    res = jnp.dot(wex, xt, preferred_element_type=f32)
    res = res + jnp.dot(wes, st, preferred_element_type=f32)        # (C, N) f32
    g = jnp.dot(w1_ref[...], xt, preferred_element_type=f32)
    g = g + jnp.dot(w2_ref[...], st, preferred_element_type=f32)    # (1, N) f32
    gate = jax.nn.sigmoid(g + b_ref[0])
    o_ref[0] = (res * gate).astype(o_ref.dtype)


# ----------------------------------------------------------------------------
# Two-pass fallback, pass 1: per-(split, batch) channel sums of x and skip.
# Grid = (n_split, B, tiles_per_split); spatial axis is the trailing
# "arbitrary" reduction axis.  The tiny attention matmul happens in the
# wrapper (plain XLA) on the combined sums.
# ----------------------------------------------------------------------------
def _pool_sums_kernel(x_ref, s_ref, ox_ref, os_ref, accx_ref, accs_ref, *,
                      tn, acc_w, tiles_per_split, n_spatial, needs_mask):
    split = pl.program_id(0)
    n = pl.program_id(2)
    f32 = jnp.float32

    @pl.when(n == 0)
    def _():
        accx_ref[...] = jnp.zeros_like(accx_ref)
        accs_ref[...] = jnp.zeros_like(accs_ref)

    xt = x_ref[0]                                     # (C, tn)
    st = s_ref[0]
    if needs_mask:
        # Zero out lanes past the end of the volume (ragged last tile) and
        # whole tiles that belong to a shorter split (overrun -> limit <= 0).
        t_global = split * tiles_per_split + n
        limit = n_spatial - t_global * tn
        lane = lax.broadcasted_iota(jnp.int32, (1, tn), 1)
        keep = lane < limit
        xt = jnp.where(keep, xt, jnp.zeros_like(xt))
        st = jnp.where(keep, st, jnp.zeros_like(st))

    # VPU adds onto a lane-wide accumulator; the cross-lane XLU reduction
    # happens once per (split, batch) in the finalize below.
    accx = accx_ref[...]
    accs = accs_ref[...]
    for k in range(tn // acc_w):
        sl = slice(k * acc_w, (k + 1) * acc_w)
        accx = accx + xt[:, sl].astype(f32)
        accs = accs + st[:, sl].astype(f32)
    accx_ref[...] = accx
    accs_ref[...] = accs

    @pl.when(n == pl.num_programs(2) - 1)
    def _():
        ox_ref[0, 0] = jnp.sum(accx_ref[...], axis=-1, keepdims=True)
        os_ref[0, 0] = jnp.sum(accs_ref[...], axis=-1, keepdims=True)


# ----------------------------------------------------------------------------
# Two-pass fallback, pass 2: fused hot path per spatial tile with stacked
# weights (attention already folded in, cast to the activation dtype).
#   res  = [W_redu*att | w_gate] @ [x ; skip]     (two (C+1,C)x(C,TN) dots)
#   out  = res[:C] * sigmoid(res[C] + (b1+b2))
# ----------------------------------------------------------------------------
def _fuse_kernel(x_ref, s_ref, wx_ref, ws_ref, b_ref, o_ref, *, dim):
    xt = x_ref[0]                                     # (C, tn) native dtype
    st = s_ref[0]
    res = jnp.dot(wx_ref[0], xt, preferred_element_type=jnp.float32)
    res = res + jnp.dot(ws_ref[0], st, preferred_element_type=jnp.float32)
    gate = jax.nn.sigmoid(res[dim:dim + 1] + b_ref[0])          # (1, tn)
    o_ref[0] = (res[:dim] * gate).astype(o_ref.dtype)


# ----------------------------------------------------------------------------
# Wrapper
# ----------------------------------------------------------------------------
def dff_pallas(x, skip, w_atten, w_redu, w1, b1, w2, b2, *,
               tn=None, force_two_pass=False):
    B, C, D, H, W = x.shape
    assert skip.shape == x.shape
    N = D * H * W
    f32 = jnp.float32
    adt = x.dtype
    itemsize = jnp.dtype(adt).itemsize
    vmem_cap = _vmem_capacity_bytes()
    vmem_limit = int(vmem_cap * 0.70)

    x3 = x.reshape(B, C, N)
    s3 = skip.reshape(B, C, N)

    wa = w_atten.astype(f32)                          # (2C, 2C)
    wr = w_redu.astype(f32)                           # (C, 2C)
    w1row = w1.astype(f32).reshape(1, C)
    w2row = w2.astype(f32).reshape(1, C)
    bsum = (jnp.asarray(b1, f32) + jnp.asarray(b2, f32)).reshape(1)

    # ---------------- fused single pass: x/skip read from HBM exactly once ---
    if (not force_two_pass) and tn is None and _fused_fits(N, C, itemsize, vmem_cap):
        out3 = pl.pallas_call(
            functools.partial(_dff_fused_kernel, dim=C, inv_n=1.0 / float(N)),
            out_shape=jax.ShapeDtypeStruct((B, C, N), adt),
            grid_spec=pltpu.PrefetchScalarGridSpec(
                num_scalar_prefetch=0,
                grid=(B,),
                in_specs=[
                    pl.BlockSpec((1, C, N), lambda b: (b, 0, 0)),       # x
                    pl.BlockSpec((1, C, N), lambda b: (b, 0, 0)),       # skip
                    pl.BlockSpec((2 * C, C), lambda b: (0, 0)),         # W_att | x
                    pl.BlockSpec((2 * C, C), lambda b: (0, 0)),         # W_att | skip
                    pl.BlockSpec((C, C), lambda b: (0, 0)),             # W_redu | x
                    pl.BlockSpec((C, C), lambda b: (0, 0)),             # W_redu | skip
                    pl.BlockSpec((1, C), lambda b: (0, 0)),             # w1 gate row
                    pl.BlockSpec((1, C), lambda b: (0, 0)),             # w2 gate row
                    pl.BlockSpec(memory_space=pltpu.MemorySpace.SMEM),  # gate bias
                ],
                out_specs=pl.BlockSpec((1, C, N), lambda b: (b, 0, 0)),
            ),
            compiler_params=pltpu.CompilerParams(
                dimension_semantics=("parallel",),
                vmem_limit_bytes=vmem_limit),
        )(x3, s3, wa[:, :C], wa[:, C:], wr[:, :C], wr[:, C:],
          w1row.astype(adt), w2row.astype(adt), bsum)
        return out3.reshape(B, C, D, H, W)

    # ---------------- two-pass fallback (per-batch volume exceeds VMEM) ------
    if tn is None:
        tn, n_tiles = _choose_tile(N, C, itemsize, vmem_cap)
    else:
        assert tn % 128 == 0, "tn must be a multiple of 128"
        n_tiles = pl.cdiv(N, tn)
    acc_w = 512 if (tn >= 512 and tn % 512 == 0) else 128

    # Give pass 1 a leading parallel axis so the spatial reduction is sharded
    # across the two v7x TensorCores when B == 1 (harmless on v5e/v6e).
    n_split = 2 if (B == 1 and n_tiles >= 2) else 1
    tps = pl.cdiv(n_tiles, n_split)
    needs_mask = (N % tn != 0) or (n_tiles % n_split != 0)

    def _act_map(s, b, n):
        # Clamp overrun tiles of the shorter split; their contribution is
        # masked to zero inside the kernel.
        return (b, 0, jnp.minimum(s * tps + n, n_tiles - 1))

    sums_x, sums_s = pl.pallas_call(
        functools.partial(_pool_sums_kernel, tn=tn, acc_w=acc_w,
                          tiles_per_split=tps, n_spatial=N,
                          needs_mask=needs_mask),
        out_shape=(jax.ShapeDtypeStruct((n_split, B, C, 1), f32),
                   jax.ShapeDtypeStruct((n_split, B, C, 1), f32)),
        grid_spec=pltpu.PrefetchScalarGridSpec(
            num_scalar_prefetch=0,
            grid=(n_split, B, tps),
            in_specs=[
                pl.BlockSpec((1, C, tn), _act_map),
                pl.BlockSpec((1, C, tn), _act_map),
            ],
            out_specs=[
                pl.BlockSpec((1, 1, C, 1), lambda s, b, n: (s, b, 0, 0)),
                pl.BlockSpec((1, 1, C, 1), lambda s, b, n: (s, b, 0, 0)),
            ],
            scratch_shapes=[pltpu.VMEM((C, acc_w), f32),
                            pltpu.VMEM((C, acc_w), f32)],
        ),
        compiler_params=pltpu.CompilerParams(
            dimension_semantics=("parallel", "parallel", "arbitrary"),
            vmem_limit_bytes=vmem_limit),
    )(x3, s3)

    # Tiny per-batch channel attention + weight folding in plain XLA (f32),
    # cast to the activation dtype only at the end.
    pooled = jnp.concatenate([jnp.sum(sums_x, axis=0)[..., 0],
                              jnp.sum(sums_s, axis=0)[..., 0]],
                             axis=1) / float(N)                  # (B, 2C)
    att = jax.nn.sigmoid(pooled @ wa.T)                          # (B, 2C)

    wx_eff = wr[None, :, :C] * att[:, None, :C]                  # (B, C, C)
    ws_eff = wr[None, :, C:] * att[:, None, C:]                  # (B, C, C)
    w1b = jnp.broadcast_to(w1row[None], (B, 1, C))
    w2b = jnp.broadcast_to(w2row[None], (B, 1, C))
    wx_stack = jnp.concatenate([wx_eff, w1b], axis=1).astype(adt)   # (B, C+1, C)
    ws_stack = jnp.concatenate([ws_eff, w2b], axis=1).astype(adt)   # (B, C+1, C)

    out3 = pl.pallas_call(
        functools.partial(_fuse_kernel, dim=C),
        out_shape=jax.ShapeDtypeStruct((B, C, N), adt),
        grid_spec=pltpu.PrefetchScalarGridSpec(
            num_scalar_prefetch=0,
            grid=(B, n_tiles),
            in_specs=[
                pl.BlockSpec((1, C, tn), lambda b, n: (b, 0, n)),       # x
                pl.BlockSpec((1, C, tn), lambda b, n: (b, 0, n)),       # skip
                pl.BlockSpec((1, C + 1, C), lambda b, n: (b, 0, 0)),    # W|x stack
                pl.BlockSpec((1, C + 1, C), lambda b, n: (b, 0, 0)),    # W|skip stack
                pl.BlockSpec(memory_space=pltpu.MemorySpace.SMEM),      # gate bias
            ],
            out_specs=pl.BlockSpec((1, C, tn), lambda b, n: (b, 0, n)),
        ),
        compiler_params=pltpu.CompilerParams(
            dimension_semantics=("parallel", "parallel"),
            vmem_limit_bytes=vmem_limit),
    )(x3, s3, wx_stack, ws_stack, bsum)
    return out3.reshape(B, C, D, H, W)


# ----------------------------------------------------------------------------
# Pure-JAX reference (mirrors the PyTorch module exactly, NCDHW layout)
# ----------------------------------------------------------------------------
def dff_ref(x, skip, w_atten, w_redu, w1, b1, w2, b2):
    cat = jnp.concatenate([x, skip], axis=1)                         # (B,2C,D,H,W)
    pooled = jnp.mean(cat, axis=(2, 3, 4))                           # (B,2C)
    att = jax.nn.sigmoid(pooled @ w_atten.T)                         # (B,2C)
    out = cat * att[:, :, None, None, None]
    out = jnp.einsum('oc,bcdhw->bodhw', w_redu, out)                 # (B,C,D,H,W)
    gate = (jnp.einsum('c,bcdhw->bdhw', w1, x) + b1
            + jnp.einsum('c,bcdhw->bdhw', w2, skip) + b2)
    gate = jax.nn.sigmoid(gate)[:, None]                             # (B,1,D,H,W)
    return out * gate


if __name__ == "__main__":
    def _check(B, dim, D, H, W, dtype=jnp.float32, tn=None, force_two_pass=False,
               rtol=1e-4, atol=1e-5):
        key = jax.random.PRNGKey(0)
        kx, ks, ka, kr, k1, k2, kb1, kb2 = jax.random.split(key, 8)
        x = jax.random.normal(kx, (B, dim, D, H, W), jnp.float32).astype(dtype)
        skip = jax.random.normal(ks, (B, dim, D, H, W), jnp.float32).astype(dtype)
        # Synthetic parameters (shapes from the module __init__).
        w_atten = 0.3 * jax.random.normal(ka, (2 * dim, 2 * dim), jnp.float32)
        w_redu = 0.3 * jax.random.normal(kr, (dim, 2 * dim), jnp.float32)
        w1 = 0.3 * jax.random.normal(k1, (dim,), jnp.float32)
        b1 = 0.1 * jax.random.normal(kb1, (), jnp.float32)
        w2 = 0.3 * jax.random.normal(k2, (dim,), jnp.float32)
        b2 = 0.1 * jax.random.normal(kb2, (), jnp.float32)

        out = jax.block_until_ready(
            dff_pallas(x, skip, w_atten, w_redu, w1, b1, w2, b2,
                       tn=tn, force_two_pass=force_two_pass))
        ref = dff_ref(x.astype(jnp.float32), skip.astype(jnp.float32),
                      w_atten, w_redu, w1, b1, w2, b2)
        np.testing.assert_allclose(np.asarray(out).astype(np.float32),
                                   np.asarray(ref), rtol=rtol, atol=atol)

    # Fused single-pass path (whole per-batch volume fits VMEM), f32.
    _check(2, 4, 8, 16, 16)
    # Fused path with ragged N (=500) and C not a multiple of 8.
    _check(1, 6, 5, 10, 10)
    # Fused path with bf16 activations (weights cast to bf16 for the big dots).
    _check(2, 4, 8, 16, 16, dtype=jnp.bfloat16, rtol=3e-2, atol=3e-2)
    # Two-pass fallback: multi-tile accumulation path.
    _check(2, 4, 8, 16, 16, force_two_pass=True, tn=256)
    # Two-pass fallback: ragged N with in-kernel last-tile masking.
    _check(2, 6, 5, 10, 10, force_two_pass=True, tn=256)
    # Two-pass fallback, B=1: pass-1 reduction split across two cores (v7x).
    _check(1, 6, 5, 10, 10, force_two_pass=True, tn=256)

    print("KERNEL_OK")
</pallas_src>

<mosaic_0001>
module attributes {stable_mosaic.version = 11 : i64} {
  func.func @_dff_fused_kernel(%arg0: i32, %arg1: memref<1x4x2048xf32, #tpu.memory_space<vmem>>, %arg2: memref<1x4x2048xf32, #tpu.memory_space<vmem>>, %arg3: memref<8x4xf32, #tpu.memory_space<vmem>>, %arg4: memref<8x4xf32, #tpu.memory_space<vmem>>, %arg5: memref<4x4xf32, #tpu.memory_space<vmem>>, %arg6: memref<4x4xf32, #tpu.memory_space<vmem>>, %arg7: memref<1x4xf32, #tpu.memory_space<vmem>>, %arg8: memref<1x4xf32, #tpu.memory_space<vmem>>, %arg9: memref<1xf32, #tpu.memory_space<smem>>, %arg10: memref<1x4x2048xf32, #tpu.memory_space<vmem>>) attributes {dimension_semantics = [#tpu.dimension_semantics<parallel>], iteration_bounds = array<i64: 2>, scalar_prefetch = 0 : i64, scratch_operands = 0 : i64, tpu.core_type = #tpu.core_type<tc>, window_params = [{transform_indices = @transform_0, window_bounds = array<i64: 1, 4, 2048>}, {transform_indices = @transform_1, window_bounds = array<i64: 1, 4, 2048>}, {pipeline_mode = #tpu.pipeline_mode<synchronous>, transform_indices = @transform_2, window_bounds = array<i64: 8, 4>}, {pipeline_mode = #tpu.pipeline_mode<synchronous>, transform_indices = @transform_3, window_bounds = array<i64: 8, 4>}, {pipeline_mode = #tpu.pipeline_mode<synchronous>, transform_indices = @transform_4, window_bounds = array<i64: 4, 4>}, {pipeline_mode = #tpu.pipeline_mode<synchronous>, transform_indices = @transform_5, window_bounds = array<i64: 4, 4>}, {pipeline_mode = #tpu.pipeline_mode<synchronous>, transform_indices = @transform_6, window_bounds = array<i64: 1, 4>}, {pipeline_mode = #tpu.pipeline_mode<synchronous>, transform_indices = @transform_7, window_bounds = array<i64: 1, 4>}, {transform_indices = @transform_8, window_bounds = array<i64: 1>}, {transform_indices = @transform_9, window_bounds = array<i64: 1, 4, 2048>}]} {
    %c0 = arith.constant 0 : index
    %c0_0 = arith.constant 0 : index
    %c0_1 = arith.constant 0 : index
    %0 = vector.load %arg1[%c0, %c0_0, %c0_1] : memref<1x4x2048xf32, #tpu.memory_space<vmem>>, vector<1x4x2048xf32>
    %1 = vector.shape_cast %0 : vector<1x4x2048xf32> to vector<4x2048xf32>
    %c0_2 = arith.constant 0 : index
    %c0_3 = arith.constant 0 : index
    %c0_4 = arith.constant 0 : index
    %2 = vector.load %arg2[%c0_2, %c0_3, %c0_4] : memref<1x4x2048xf32, #tpu.memory_space<vmem>>, vector<1x4x2048xf32>
    %3 = vector.shape_cast %2 : vector<1x4x2048xf32> to vector<4x2048xf32>
    %cst = arith.constant dense<0.000000e+00> : vector<4xf32>
    %4 = vector.multi_reduction <add>, %1, %cst [1] : vector<4x2048xf32> to vector<4xf32>
    %5 = vector.shape_cast %4 : vector<4xf32> to vector<4x1xf32>
    %cst_5 = arith.constant 4.8828125E-4 : f32
    %6 = vector.broadcast %cst_5 : f32 to vector<4x1xf32>
    %7 = arith.mulf %5, %6 : vector<4x1xf32>
    %cst_6 = arith.constant dense<0.000000e+00> : vector<4xf32>
    %8 = vector.multi_reduction <add>, %3, %cst_6 [1] : vector<4x2048xf32> to vector<4xf32>
    %9 = vector.shape_cast %8 : vector<4xf32> to vector<4x1xf32>
    %cst_7 = arith.constant 4.8828125E-4 : f32
    %10 = vector.broadcast %cst_7 : f32 to vector<4x1xf32>
    %11 = arith.mulf %9, %10 : vector<4x1xf32>
    %c0_8 = arith.constant 0 : index
    %c0_9 = arith.constant 0 : index
    %12 = vector.load %arg3[%c0_8, %c0_9] : memref<8x4xf32, #tpu.memory_space<vmem>>, vector<8x4xf32>
    %cst_10 = arith.constant dense<0.000000e+00> : vector<8x1xf32>
    %13 = tpu.matmul %12, %7, %cst_10 {dimension_numbers = #tpu.dot_dimension_numbers<[1], [0], [0], [1], [0, 0, 1, 1], [], []>} : vector<8x4xf32>, vector<4x1xf32>, vector<8x1xf32> -> vector<8x1xf32>
    %c0_11 = arith.constant 0 : index
    %c0_12 = arith.constant 0 : index
    %14 = vector.load %arg4[%c0_11, %c0_12] : memref<8x4xf32, #tpu.memory_space<vmem>>, vector<8x4xf32>
    %cst_13 = arith.constant dense<0.000000e+00> : vector<8x1xf32>
    %15 = tpu.matmul %14, %11, %cst_13 {dimension_numbers = #tpu.dot_dimension_numbers<[1], [0], [0], [1], [0, 0, 1, 1], [], []>} : vector<8x4xf32>, vector<4x1xf32>, vector<8x1xf32> -> vector<8x1xf32>
    %16 = arith.addf %13, %15 : vector<8x1xf32>
    %17 = arith.negf %16 : vector<8x1xf32>
    %18 = math.exp %17 : vector<8x1xf32>
    %cst_14 = arith.constant 1.000000e+00 : f32
    %19 = vector.broadcast %cst_14 : f32 to vector<8x1xf32>
    %20 = arith.addf %19, %18 : vector<8x1xf32>
    %21 = arith.divf %19, %20 : vector<8x1xf32>
    %22 = tpu.iota {dimensions = array<i32: 0>} : vector<4x4xi32>
    %23 = tpu.iota {dimensions = array<i32: 1>} : vector<4x4xi32>
    %24 = arith.cmpi eq, %22, %23 : vector<4x4xi32>
    %25 = arith.extui %24 : vector<4x4xi1> to vector<4x4xi32>
    %26 = arith.sitofp %25 : vector<4x4xi32> to vector<4x4xf32>
    %27 = vector.extract_strided_slice %21 {offsets = [0, 0], sizes = [4, 1], strides = [1, 1]} : vector<8x1xf32> to vector<4x1xf32>
    %28 = vector.broadcast %27 : vector<4x1xf32> to vector<4x4xf32>
    %29 = arith.mulf %26, %28 : vector<4x4xf32>
    %30 = vector.extract_strided_slice %21 {offsets = [4, 0], sizes = [4, 1], strides = [1, 1]} : vector<8x1xf32> to vector<4x1xf32>
    %31 = vector.broadcast %30 : vector<4x1xf32> to vector<4x4xf32>
    %32 = arith.mulf %26, %31 : vector<4x4xf32>
    %c0_15 = arith.constant 0 : index
    %c0_16 = arith.constant 0 : index
    %33 = vector.load %arg5[%c0_15, %c0_16] : memref<4x4xf32, #tpu.memory_space<vmem>>, vector<4x4xf32>
    %cst_17 = arith.constant dense<0.000000e+00> : vector<4x4xf32>
    %34 = tpu.matmul %33, %29, %cst_17 {dimension_numbers = #tpu.dot_dimension_numbers<[1], [0], [0], [1], [0, 0, 1, 1], [], []>} : vector<4x4xf32>, vector<4x4xf32>, vector<4x4xf32> -> vector<4x4xf32>
    %c0_18 = arith.constant 0 : index
    %c0_19 = arith.constant 0 : index
    %35 = vector.load %arg6[%c0_18, %c0_19] : memref<4x4xf32, #tpu.memory_space<vmem>>, vector<4x4xf32>
    %cst_20 = arith.constant dense<0.000000e+00> : vector<4x4xf32>
    %36 = tpu.matmul %35, %32, %cst_20 {dimension_numbers = #tpu.dot_dimension_numbers<[1], [0], [0], [1], [0, 0, 1, 1], [], []>} : vector<4x4xf32>, vector<4x4xf32>, vector<4x4xf32> -> vector<4x4xf32>
    %cst_21 = arith.constant dense<0.000000e+00> : vector<4x2048xf32>
    %37 = tpu.matmul %34, %1, %cst_21 {dimension_numbers = #tpu.dot_dimension_numbers<[1], [0], [0], [1], [0, 0, 1, 1], [], []>} : vector<4x4xf32>, vector<4x2048xf32>, vector<4x2048xf32> -> vector<4x2048xf32>
    %cst_22 = arith.constant dense<0.000000e+00> : vector<4x2048xf32>
    %38 = tpu.matmul %36, %3, %cst_22 {dimension_numbers = #tpu.dot_dimension_numbers<[1], [0], [0], [1], [0, 0, 1, 1], [], []>} : vector<4x4xf32>, vector<4x2048xf32>, vector<4x2048xf32> -> vector<4x2048xf32>
    %39 = arith.addf %37, %38 : vector<4x2048xf32>
    %c0_23 = arith.constant 0 : index
    %c0_24 = arith.constant 0 : index
    %40 = vector.load %arg7[%c0_23, %c0_24] : memref<1x4xf32, #tpu.memory_space<vmem>>, vector<1x4xf32>
    %cst_25 = arith.constant dense<0.000000e+00> : vector<1x2048xf32>
    %41 = tpu.matmul %40, %1, %cst_25 {dimension_numbers = #tpu.dot_dimension_numbers<[1], [0], [0], [1], [0, 0, 1, 1], [], []>} : vector<1x4xf32>, vector<4x2048xf32>, vector<1x2048xf32> -> vector<1x2048xf32>
    %c0_26 = arith.constant 0 : index
    %c0_27 = arith.constant 0 : index
    %42 = vector.load %arg8[%c0_26, %c0_27] : memref<1x4xf32, #tpu.memory_space<vmem>>, vector<1x4xf32>
    %cst_28 = arith.constant dense<0.000000e+00> : vector<1x2048xf32>
    %43 = tpu.matmul %42, %3, %cst_28 {dimension_numbers = #tpu.dot_dimension_numbers<[1], [0], [0], [1], [0, 0, 1, 1], [], []>} : vector<1x4xf32>, vector<4x2048xf32>, vector<1x2048xf32> -> vector<1x2048xf32>
    %44 = arith.addf %41, %43 : vector<1x2048xf32>
    %c0_29 = arith.constant 0 : index
    %45 = memref.load %arg9[%c0_29] : memref<1xf32, #tpu.memory_space<smem>>
    %46 = vector.broadcast %45 : f32 to vector<1x2048xf32>
    %47 = arith.addf %44, %46 : vector<1x2048xf32>
    %48 = arith.negf %47 : vector<1x2048xf32>
    %49 = math.exp %48 : vector<1x2048xf32>
    %cst_30 = arith.constant 1.000000e+00 : f32
    %50 = vector.broadcast %cst_30 : f32 to vector<1x2048xf32>
    %51 = arith.addf %50, %49 : vector<1x2048xf32>
    %52 = arith.divf %50, %51 : vector<1x2048xf32>
    %53 = vector.broadcast %52 : vector<1x2048xf32> to vector<4x2048xf32>
    %54 = arith.mulf %39, %53 : vector<4x2048xf32>
    %c0_31 = arith.constant 0 : index
    %c0_32 = arith.constant 0 : index
    %c0_33 = arith.constant 0 : index
    %55 = vector.load %arg10[%c0_31, %c0_32, %c0_33] : memref<1x4x2048xf32, #tpu.memory_space<vmem>>, vector<1x4x2048xf32>
    %56 = vector.shape_cast %55 : vector<1x4x2048xf32> to vector<4x2048xf32>
    %57 = vector.shape_cast %54 : vector<4x2048xf32> to vector<1x4x2048xf32>
    tpu.vector_store %arg10[%c0_31, %c0_32, %c0_33], %57 {strides = array<i32>} : memref<1x4x2048xf32, #tpu.memory_space<vmem>>, vector<1x4x2048xf32>,
    return
  }
  func.func @transform_0(%arg0: i32) -> (i32, i32, i32) {
    %c0_i32 = arith.constant 0 : i32
    %c0_i32_0 = arith.constant 0 : i32
    %c0_i32_1 = arith.constant 0 : i32
    return %arg0, %c0_i32, %c0_i32_0 : i32, i32, i32
  }
  func.func @transform_1(%arg0: i32) -> (i32, i32, i32) {
    %c0_i32 = arith.constant 0 : i32
    %c0_i32_0 = arith.constant 0 : i32
    %c0_i32_1 = arith.constant 0 : i32
    return %arg0, %c0_i32, %c0_i32_0 : i32, i32, i32
  }
  func.func @transform_2(%arg0: i32) -> (i32, i32) {
    %c0_i32 = arith.constant 0 : i32
    %c0_i32_0 = arith.constant 0 : i32
    %c0_i32_1 = arith.constant 0 : i32
    return %c0_i32, %c0_i32_0 : i32, i32
  }
  func.func @transform_3(%arg0: i32) -> (i32, i32) {
    %c0_i32 = arith.constant 0 : i32
    %c0_i32_0 = arith.constant 0 : i32
    %c0_i32_1 = arith.constant 0 : i32
    return %c0_i32, %c0_i32_0 : i32, i32
  }
  func.func @transform_4(%arg0: i32) -> (i32, i32) {
    %c0_i32 = arith.constant 0 : i32
    %c0_i32_0 = arith.constant 0 : i32
    %c0_i32_1 = arith.constant 0 : i32
    return %c0_i32, %c0_i32_0 : i32, i32
  }
  func.func @transform_5(%arg0: i32) -> (i32, i32) {
    %c0_i32 = arith.constant 0 : i32
    %c0_i32_0 = arith.constant 0 : i32
    %c0_i32_1 = arith.constant 0 : i32
    return %c0_i32, %c0_i32_0 : i32, i32
  }
  func.func @transform_6(%arg0: i32) -> (i32, i32) {
    %c0_i32 = arith.constant 0 : i32
    %c0_i32_0 = arith.constant 0 : i32
    %c0_i32_1 = arith.constant 0 : i32
    return %c0_i32, %c0_i32_0 : i32, i32
  }
  func.func @transform_7(%arg0: i32) -> (i32, i32) {
    %c0_i32 = arith.constant 0 : i32
    %c0_i32_0 = arith.constant 0 : i32
    %c0_i32_1 = arith.constant 0 : i32
    return %c0_i32, %c0_i32_0 : i32, i32
  }
  func.func @transform_8(%arg0: i32) -> i32 {
    %c0_i32 = arith.constant 0 : i32
    %c0_i32_0 = arith.constant 0 : i32
    return %c0_i32 : i32
  }
  func.func @transform_9(%arg0: i32) -> (i32, i32, i32) {
    %c0_i32 = arith.constant 0 : i32
    %c0_i32_0 = arith.constant 0 : i32
    %c0_i32_1 = arith.constant 0 : i32
    return %arg0, %c0_i32, %c0_i32_0 : i32, i32, i32
  }
}

</mosaic_0001>

<bundles_post_ra>
// kernel: tpu_custom_call.1
= control target key start
LH: loop header
LB: loop body
LE: loop exit
PB: predicated region body
PF: predicated region fallthrough
CT: control target
= control target key end

     0   :  { %s4755_s0 = inlined_call_operand.hbm [shape: f32[2,4,2048], index: 0, kind: input, shape index: {}]   ;;  %s4756_s1 = inlined_call_operand.hbm [shape: f32[2,4,2048], index: 1, kind: input, shape index: {}]   ;;  %s4757_s2 = inlined_call_operand.vmem [shape: f32[8,4], index: 2, kind: input, shape index: {}]   ;;  %s4758_s3 = inlined_call_operand.vmem [shape: f32[8,4], index: 3, kind: input, shape index: {}]   ;;  %s4759_s4 = inlined_call_operand.vmem [shape: f32[4,4], index: 4, kind: input, shape index: {}]   ;;  %s4760_s5 = inlined_call_operand.vmem [shape: f32[4,4], index: 5, kind: input, shape index: {}]   ;;  %s4761_s6 = inlined_call_operand.vmem [shape: f32[1,4], index: 6, kind: input, shape index: {}]   ;;  %s4762_s7 = inlined_call_operand.vmem [shape: f32[1,4], index: 7, kind: input, shape index: {}]   ;;  %s4763_s8 = inlined_call_operand.<no memory space> [shape: f32[1], index: 8, kind: input, shape index: {}]   ;;  %s4764_s9 = inlined_call_operand.hbm [shape: f32[2,4,2048], index: 9, kind: output, shape index: {}]  }
   0x1   :  { %4769 = sst [smem:[#allocation13_spill]] %s4755_s0 }
   0x2   :  { %14 = sst [smem:[#allocation2]] %s4763_s8 }
   0x3   :  { %15 = vsyncpa [#allocation4], 0 }
   0x4   :  { %17 = vsyncpa [#allocation4 + $0x1], 0 }
   0x5   :  { %18 = vsyncpa [#allocation7], 0 }
   0x6   :  { %20 = vsyncpa [#allocation7 + $0x1], 0 }
   0x7   :  { %21 = vsyncpa [#allocation5], 0 }
   0x8   :  { %23 = vsyncpa [#allocation5 + $0x1], 0  ;;  %s4040_s11 = smov 0   ;;  %s4042_s12 = smov 0  }
   0x9   :  { %s4044_s13 = smov 0   ;;  %s4046_s14 = smov 0  }
   0xa LB: > { %s4061_s8 = sadd.s32 4294967295, %s3979_s14   ;;  %s3544_s15 = sadd.s32 4294967294, %s3979_s14   ;;  %s3979_s14 = sphi %s4046_s14, %s4791_s14   ;;  %s3975_s13 = sphi %s4044_s13, %s4790_s13   ;;  %s3971_s12 = sphi %s4042_s12, %s4789_s12   ;;  %s3967_s11 = sphi %s4040_s11, %s4788_s11  }
   0xb   : > { %s4065_s16 = sadd.s32 1, %s3979_s14   ;;  %s36_s17 = sadd.s32 1, %s3975_s13 }
   0xc   : > { %s33_s18 = ssub.s32 %s3979_s14, %s4065_s16  ;;  %p43_p0 = scmp.ne.s32.totalorder %s3975_s13, %s3971_s12 }
   0xd   : > { %p34_p1 = scmp.eq.s32.totalorder %s33_s18, 0  ;;  %p44_p2 = scmp.eq.s32.totalorder %s3979_s14, 0 }
   0xe   : > { %p49_p3 = scmp.ne.s32.totalorder %s3971_s12, %s3967_s11  ;;  %p50_p4 = scmp.eq.s32.totalorder %s4061_s8, 0 }
   0xf   : > { %s4077_s19 = scalar_select %p34_p1, %s3975_s13, %s36_s17  }
  0x10   : > { %p4079_p5 = por %p44_p2, %p43_p0  ;;  %p4083_p6 = por %p50_p4, %p49_p3 }
  0x11   : > { %4770 = sst [smem:[#allocation12_spill]] %s4077_s19  ;;  %p246_p7 = scmp.eq.s32.totalorder %s4061_s8, 1 }
  0x12   : > { %s4772_s21 = scalar_select %p4083_p6, 1, 0 }
  0x13   : > { %p252_p8 = scmp.eq.s32.totalorder %s3544_s15, 1  ;;  %p3732_p10 = scmp.lt.s32.totalorder %s3979_s14, 2 }
  0x14   : > { %p4090_p11 = por %p246_p7, %p43_p0  ;;  %s4099_s24 = sand.u32 1, %s3975_s13  }
  0x15   : > { %p4094_p12 = por %p252_p8, %p49_p3  ;;  %s4766_s25 = sshll.u32 %s3979_s14, 10 }
  0x16   : > { %s4773_s22 = scalar_select %p4090_p11, 1, 0 }
  0x17   : > { %s4774_s23 = scalar_select %p4094_p12, 1, 0 }
  0x18   : > { %s4765_s26 = sshll.u32 %s4099_s24, 6  ;;  %s4775_s0 = sld [smem:[#allocation13_spill]] }
  0x19   : > { %s297_s30 = scalar_lea.vmem [#allocation3], %s4765_s26  ;;  %p4114_p13 = pnand %p3732_p10, %p4079_p5 }
  0x1a   : > { %s305_s10 = sshll.u32 %s297_s30, 4  ;;  %s294_s17 = scalar_lea.sflag [#allocation4], %s4099_s24  ;;  %s4118_s10 = int_to_ptr.vmem [resolvable:$true] %s305_s10 }
  0x1b   : > { %p3857_p3 = pneg %p4114_p13 }
  0x1e   : > { %s4108_s29 = scalar_lea.hbm %s4775_s0, %s4766_s25  ;;  %s3860_s28 = scalar_lea.hbm %s4775_s0, 2048 }
  0x1f   : > { %s3855_s18 = scalar_lea.hbm %s4108_s29, 1024  ;;  %p3861_p5 = scmp.lt.s32.totalorder %s4108_s29, %s4775_s0 }
  0x20   : > { %p3856_p2 = scmp.ne.s32.totalorder %s4108_s29, %s3855_s18  ;;  %p3862_p8 = scmp.lt.s32.totalorder %s3860_s28, %s3855_s18 }
  0x22   : > { %p3858_p4 = pnand %p3857_p3, %p3856_p2  ;;  %p3863_p10 = por %p3862_p8, %p3861_p5 }
  0x24   : > { %p3859_p7 = pneg %p3858_p4 }
  0x26   : > { %p3864_p9 = pnand %p3863_p10, %p3859_p7 }
  0x28   : > { %3867 = shalt.err (!%p3864_p9)
}
  0x29   : > { %s3868_s25 = scalar_lea.vmem %s4118_s10, 1024  ;;  %s3981_s20 = smov [#allocation3]  }
  0x2a   : > { %p3869_p0 = scmp.ne.s32.totalorder %s4118_s10, %s3868_s25  ;;  %s3873_s27 = sshll.u32 %s3981_s20, 4  ;;  %s3874_s27 = int_to_ptr.vmem [resolvable:$false] %s3873_s27 }
  0x2b   : > { %s3875_s19 = scalar_lea.vmem %s3874_s27, 2048  ;;  %p3876_p1 = scmp.lt.s32.totalorder %s4118_s10, %s3874_s27 }
  0x2c   : > { %p3871_p2 = pnand %p3869_p0, %p3857_p3  ;;  %p3877_p12 = scmp.lt.s32.totalorder %s3875_s19, %s3868_s25 }
  0x2e   : > { %p3872_p4 = pneg %p3871_p2  ;;  %p3878_p11 = por %p3877_p12, %p3876_p1 }
  0x30   : > { %p3879_p5 = pnand %p3878_p11, %p3872_p4 }
  0x32   : > { %3882 = shalt.err (!%p3879_p5)
}
  0x33   : > { %3724 = dma.hbm_to_vmem [thread:$0]  (!%p4114_p13), %s4108_s29, 1024, %s4118_s10, %s294_s17  }
  0x34   : > { %p4777_p9 = scmp.lt.s32.totalorder %s3979_s14, 3  ;;  %p4778_p0 = scmp.ge.s32.totalorder %s3979_s14, 1 }
  0x35   : > { %s4780_s19 = sshll.u32 %s3979_s14, 10  ;;  %s4781_s30 = sshll.u32 %s4099_s24, 6 }
  0x36   : > { %p4151_p7 = pnand %p4778_p0, %p4777_p9  ;;  %s4160_s28 = scalar_lea.hbm %s4756_s1, %s4780_s19 }
  0x37   : > { %s316_s20 = scalar_lea.vmem [#allocation6], %s4781_s30  ;;  %s313_s29 = scalar_lea.sflag [#allocation7], %s4099_s24 }
  0x38   : > { %s4779_s26 = scalar_select %p4151_p7, 1, 0 }
  0x39   : > { %s324_s27 = sshll.u32 %s316_s20, 4  ;;  %s3883_s10 = scalar_lea.hbm %s4160_s28, 1024  ;;  %s325_s27 = int_to_ptr.vmem [resolvable:$true] %s324_s27 }
  0x3a   : > { %p3884_p11 = scmp.ne.s32.totalorder %s4160_s28, %s3883_s10  ;;  %s3888_s25 = scalar_lea.hbm %s4756_s1, 2048 }
  0x3b   : > { %p3889_p8 = scmp.lt.s32.totalorder %s4160_s28, %s4756_s1  ;;  %p3890_p10 = scmp.lt.s32.totalorder %s3888_s25, %s3883_s10 }
  0x3c   : > { %p3886_p12 = pnand %p3884_p11, %p3857_p3 }
  0x3d   : > { %p3891_p2 = por %p3890_p10, %p3889_p8 }
  0x3e   : > { %p3887_p1 = pneg %p3886_p12 }
  0x40   : > { %p3892_p4 = pnand %p3891_p2, %p3887_p1 }
  0x42   : > { %3895 = shalt.err (!%p3892_p4)
}
  0x43   : > { %s3896_s30 = scalar_lea.vmem %s325_s27, 1024  ;;  %s3982_s24 = smov [#allocation6]  }
  0x44   : > { %p3897_p5 = scmp.ne.s32.totalorder %s325_s27, %s3896_s30  ;;  %s3901_s20 = sshll.u32 %s3982_s24, 4  ;;  %s3902_s20 = int_to_ptr.vmem [resolvable:$false] %s3901_s20 }
  0x45   : > { %s3903_s0 = scalar_lea.vmem %s3902_s20, 2048  ;;  %p3904_p11 = scmp.lt.s32.totalorder %s325_s27, %s3902_s20 }
  0x46   : > { %p3899_p9 = pnand %p3897_p5, %p3857_p3  ;;  %p3905_p12 = scmp.lt.s32.totalorder %s3903_s0, %s3896_s30 }
  0x48   : > { %p3900_p0 = pneg %p3899_p9  ;;  %p3906_p6 = por %p3905_p12, %p3904_p11 }
  0x4a   : > { %p3907_p7 = pnand %p3906_p6, %p3900_p0 }
  0x4c   : > { %3910 = shalt.err (!%p3907_p7)
}
  0x4d   : > { %3727 = dma.hbm_to_vmem [thread:$0]  (!%p4114_p13), %s4160_s28, 1024, %s325_s27, %s313_s29  }
  0x4e   : > { %p4782_p1 = scmp.ne.s32.totalorder %s4779_s26, 0 }
  0x4f   : > { %s4186_s10 = sand.u32 (!%p4782_p1), 1, %s3971_s12   ;;  %p4783_p6 = scmp.ne.s32.totalorder (!%p4782_p1), %s4772_s21, 0 }
  0x50   : > { %333 = sbr.rel (%p4782_p1) target bundleno = 1132 (0x46c), region = 56  ;;  %s4189_s17 = sshll.u32 (!%p4782_p1), %s4186_s10, 6 }
  0x51   : > { %s336_s25 = scalar_lea.sflag (!%p4782_p1), [#allocation4], %s4186_s10  ;;  %s4193_s19 = scalar_lea.vmem (!%p4782_p1), [#allocation3], %s4189_s17 }
  0x55   : > { %3954 = dma.done.wait (%p4783_p6), %s336_s25, 1024  }
  0x56   : > { %3956 = vsyncadd (%p4783_p6), %s336_s25, 4294966272  ;;  %s345_s15 = scalar_lea.sflag [#allocation7], %s4186_s10  ;;  %s4201_s26 = scalar_lea.vmem [#allocation6], %s4189_s17 }
  0x57   : > { %3958 = dma.done.wait (%p4783_p6), %s345_s15, 1024  }
  0x58   : > { %3960 = vsyncadd (%p4783_p6), %s345_s15, 4294966272  ;;  %vm428_vm0 = vcmask 1043456   ;;  %v4208_v0 = vld [vmem:[%s4193_s19] sm:$0xff]  ;;  %v4211_v1 = vld [vmem:[%s4193_s19 + $0x8] sm:$0xff]  ;;  %vm3984_vm1 = vmmov 0   ;;  %vm523_vm2 = vcmask 31744  }
  0x59   : > { %v4215_v2 = vcombine.high %v4208_v0, %v4208_v0  ;;  %v4219_v3 = vcombine.high %v4211_v1, %v4211_v1  ;;  %v429_v4 = vsel %vm428_vm0, %v4208_v0, 0.0  ;;  %v4224_v5 = vld [vmem:[%s4193_s19 + $0x10] sm:$0xff]  ;;  %v432_v7 = vsel %vm428_vm0, %v4211_v1, 0.0  ;;  %v4231_v9 = vld [vmem:[%s4201_s26] sm:$0xff]  ;;  %v4240_v12 = vld [vmem:[%s4201_s26 + $0x8] sm:$0xff]  ;;  %s4689_s21 = scalar_lea.vmem [#allocation8], %s4189_s17 }
  0x5a   : > { %v4235_v10 = vcombine.high %v4224_v5, %v4224_v5  ;;  %v4243_v13 = vld [vmem:[%s4193_s19 + $0x18] sm:$0xff]  ;;  %v436_v15 = vsel %vm428_vm0, %v4224_v5, 0.0  ;;  %v4249_v16 = vcombine.high %v4231_v9, %v4231_v9  ;;  %v4253_v18 = vcombine.high %v4240_v12, %v4240_v12  ;;  %v4262_v21 = vld [vmem:[%s4201_s26 + $0x10] sm:$0xff]  ;;  %v4267_v23 = vld [vmem:[%s4193_s19 + $0x20] sm:$0xff]  ;;  %s3686_s17 = sshll.u32 %s4061_s8, 10  ;;  %s3451_s28 = sshll.u32 %s4689_s21, 4  ;;  %s3452_s28 = int_to_ptr.vmem [resolvable:$true] %s3451_s28 }
  0x5b   : > { %v430_v6 = vsel %vm428_vm0, %v4215_v2, 0.0  ;;  %v434_v11 = vsel %vm428_vm0, %v4219_v3, 0.0  ;;  %v4257_v19 = vcombine.high %v4243_v13, %v4243_v13  ;;  %v487_v22 = vsel %vm428_vm0, %v4231_v9, 0.0  ;;  %v4288_v34 = vld [vmem:[%s4201_s26 + $0x18] sm:$0xff]  ;;  %v4291_v36 = vld [vmem:[%s4193_s19 + $0x28] sm:$0xff]  ;;  %v4310_v46 = vld [vmem:[%s4201_s26 + $0x20] sm:$0xff]  ;;  %s3449_s18 = scalar_lea.hbm %s4764_s9, %s3686_s17 }
  0x5c   : > { %v431_v8 = vadd.f32 %v430_v6, %v429_v4  ;;  %v438_v20 = vsel %vm428_vm0, %v4235_v10, 0.0  ;;  %v488_v25 = vsel %vm428_vm0, %v4249_v16, 0.0  ;;  %v490_v26 = vsel %vm428_vm0, %v4240_v12, 0.0  ;;  %v4313_v48 = vld [vmem:[%s4193_s19 + $0x30] sm:$0xff]  ;;  %v4332_v58 = vld [vmem:[%s4201_s26 + $0x28] sm:$0xff]  ;;  %v4335_v60 = vld [vmem:[%s4193_s19 + $0x38] sm:$0xff] }
  0x5d   : > { %v440_v27 = vsel %vm428_vm0, %v4243_v13, 0.0  ;;  %v489_v28 = vadd.f32 %v488_v25, %v487_v22  ;;  %v4277_v30 = vcombine.high %v4262_v21, %v4262_v21  ;;  %v492_v31 = vsel %vm428_vm0, %v4253_v18, 0.0  ;;  %s3437_s30 = scalar_lea.sflag [#allocation5], %s4186_s10  ;;  %s3911_s24 = scalar_lea.vmem %s3452_s28, 1024 }
  0x5e   : > { %v433_v14 = vadd.f32 %v432_v7, %v431_v8  ;;  %v4283_v32 = vcombine.high %v4267_v23, %v4267_v23  ;;  %v442_v33 = vsel %vm428_vm0, %v4257_v19, 0.0  ;;  %v494_v38 = vsel %vm428_vm0, %v4262_v21, 0.0  ;;  %p3912_p13 = scmp.ne.s32.totalorder %s3452_s28, %s3911_s24  ;;  %p4784_p3 = scmp.ne.s32.totalorder %s4773_s22, 0 }
  0x5f   : > { %v491_v35 = vadd.f32 %v490_v26, %v489_v28  ;;  %v444_v39 = vsel %vm428_vm0, %v4267_v23, 0.0  ;;  %v4299_v42 = vcombine.high %v4288_v34, %v4288_v34  ;;  %v496_v43 = vsel %vm428_vm0, %v4277_v30, 0.0  ;;  %s3986_s20 = smov [#allocation8]  }
  0x60   : > { %v435_v17 = vadd.f32 %v434_v11, %v433_v14  ;;  %v4305_v44 = vcombine.high %v4291_v36, %v4291_v36  ;;  %v446_v45 = vsel %vm428_vm0, %v4283_v32, 0.0  ;;  %v498_v50 = vsel %vm428_vm0, %v4288_v34, 0.0  ;;  %p3913_p7 = pnand %p3912_p13, %p4784_p3  ;;  %s3915_s0 = sshll.u32 %s3986_s20, 4  ;;  %s3916_s0 = int_to_ptr.vmem [resolvable:$false] %s3915_s0 }
  0x61   : > { %v493_v40 = vadd.f32 %v492_v31, %v491_v35  ;;  %v448_v51 = vsel %vm428_vm0, %v4291_v36, 0.0  ;;  %v4321_v54 = vcombine.high %v4310_v46, %v4310_v46  ;;  %v500_v55 = vsel %vm428_vm0, %v4299_v42, 0.0  ;;  %v4369_v31 = vld [vmem:[%s4201_s26 + $0x38] sm:$0xff]  ;;  %s3917_s8 = scalar_lea.vmem %s3916_s0, 2048  ;;  %p3918_p10 = scmp.lt.s32.totalorder %s3452_s28, %s3916_s0 }
  0x62   : > { %v437_v24 = vadd.f32 %v436_v15, %v435_v17  ;;  %v4327_v56 = vcombine.high %v4313_v48, %v4313_v48  ;;  %v450_v57 = vsel %vm428_vm0, %v4305_v44, 0.0  ;;  %v502_v62 = vsel %vm428_vm0, %v4310_v46, 0.0  ;;  %v4354_v15 = vld [vmem:[%s4201_s26 + $0x30] sm:$0xff]  ;;  %s3202_s26 = sld [smem:[#allocation2]]  ;;  %p3914_p8 = pneg %p3913_p7 }
  0x63   : > { %v495_v47 = vadd.f32 %v494_v38, %v493_v40  ;;  %v452_v63 = vsel %vm428_vm0, %v4313_v48, 0.0  ;;  %v4343_v7 = vcombine.high %v4332_v58, %v4332_v58  ;;  %v504_v8 = vsel %vm428_vm0, %v4321_v54, 0.0  ;;  %p3919_p2 = scmp.lt.s32.totalorder %s3917_s8, %s3911_s24 }
  0x64   : > { %v439_v29 = vadd.f32 %v438_v20, %v437_v24  ;;  %v4349_v11 = vcombine.high %v4335_v60, %v4335_v60  ;;  %v454_v14 = vsel %vm428_vm0, %v4327_v56, 0.0  ;;  %v506_v22 = vsel %vm428_vm0, %v4332_v58, 0.0 }
  0x65   : > { %v497_v52 = vadd.f32 %v496_v43, %v495_v47  ;;  %v456_v24 = vsel %vm428_vm0, %v4335_v60, 0.0  ;;  %v508_v28 = vsel %vm428_vm0, %v4343_v7, 0.0  ;;  %v4375_v40 = vcombine.high %v4369_v31, %v4369_v31  ;;  %p3920_p4 = por %p3919_p2, %p3918_p10 }
  0x66   : > { %v441_v37 = vadd.f32 %v440_v27, %v439_v29  ;;  %v4362_v27 = vcombine.high %v4354_v15, %v4354_v15  ;;  %v458_v29 = vsel %vm428_vm0, %v4349_v11, 0.0 }
  0x67   : > { %v499_v59 = vadd.f32 %v498_v50, %v497_v52  ;;  %v3983_v52 = vmov 0.0   ;;  %p3921_p5 = pnand %p3920_p4, %p3914_p8 }
  0x68   : > { %v443_v41 = vadd.f32 %v442_v33, %v441_v37  ;;  %v510_v37 = vsel %vm428_vm0, %v4354_v15, 0.0  ;;  %3700 = vmatprep.subr.mxu1 %v3983_v52  ;;  %3695 = vmatprep.subr.mxu0 %v3983_v52 }
  0x69   : > { %v501_v4 = vadd.f32 %v500_v55, %v499_v59  ;;  %3702 = vmatprep.mubr.msk.f32.mxu1 %vm3984_vm1, %v3983_v52  ;;  %3697 = vmatprep.mubr.msk.f32.mxu0 %vm3984_vm1, %v3983_v52 }
  0x6a   : > { %v445_v49 = vadd.f32 %v444_v39, %v443_v41  ;;  %v512_v41 = vsel %vm428_vm0, %v4362_v27, 0.0 }
  0x6b   : > { %v503_v17 = vadd.f32 %v502_v62, %v501_v4  ;;  %v522_v62 = vld [vmem:[%s4758_s3] sm:$0xff] }
  0x6c   : > { %v447_v53 = vadd.f32 %v446_v45, %v445_v49  ;;  %v514_v45 = vsel %vm428_vm0, %v4369_v31, 0.0  ;;  %v516_v49 = vsel %vm428_vm0, %v4375_v40, 0.0 }
  0x6d   : > { %v505_v25 = vadd.f32 %v504_v8, %v503_v17 }
  0x6e   : > { %v449_v61 = vadd.f32 %v448_v51, %v447_v53 }
  0x6f   : > { %v507_v33 = vadd.f32 %v506_v22, %v505_v25 }
  0x70   : > { %v451_v6 = vadd.f32 %v450_v57, %v449_v61  ;;  %v521_v57 = vld [vmem:[%s4757_s2] sm:$0xff] }
  0x71   : > { %v509_v38 = vadd.f32 %v508_v28, %v507_v33 }
  0x72   : > { %v453_v20 = vadd.f32 %v452_v63, %v451_v6  ;;  %v3985_v63 = vmov 0  }
  0x73   : > { %v511_v43 = vadd.f32 %v510_v37, %v509_v38  ;;  %3769 = vset.pattern.permute.xlu1 %v3985_v63  ;;  %3770 = vset.pattern.permute.xlu0 %v3985_v63 }
  0x74   : > { %v455_v26 = vadd.f32 %v454_v14, %v453_v20 }
  0x75   : > { %v513_v47 = vadd.f32 %v512_v41, %v511_v43  ;;  %v775_v43 = vld [vmem:[%s4760_s5] sm:$0xf] }
  0x76   : > { %v457_v35 = vadd.f32 %v456_v24, %v455_v26  ;;  %v682_v26 = vlaneseq }
  0x77   : > { %v515_v50 = vadd.f32 %v514_v45, %v513_v47 }
  0x78   : > { %v459_v39 = vadd.f32 %v458_v29, %v457_v35  ;;  %v4405_v28 = vshrl.u32 %v682_v26, 7  ;;  %v685_v29 = vand.u32 127, %v682_v26 }
  0x79   : > { %v517_v51 = vadd.f32 %v516_v49, %v515_v50 }
  0x7a   : > { %460 = vadd.xlane.f32.xlu0 %v459_v39  ;;  %vm686_vm3 = vcmp.eq.s32.totalorder %v4405_v28, %v685_v29  ;;  %v698_v39 = vld [vmem:[%s4759_s4] sm:$0xf] }
  0x7b   : > { %v3562_v33 = vsel %vm686_vm3, 1.0, %v3983_v52 }
  0x7e   : > { %518 = vadd.xlane.f32.xlu0 %v517_v51  ;;  %v2059_v51 = vld [vmem:[%s4762_s7] sm:$0x1] }
 0x103   : > { %v461_v53 = vpop.xlane.xlu0 %460 }
 0x104   : > { %v462_v55 = vmul.f32 0.00048828125, %v461_v53 }
 0x106   : > { %3701 = vmatpush3.msk.msra.mxu1 %vm428_vm0, %v462_v55 }
 0x107   : > { %3703 = vmatmul.mubr.msk.f32.vlgmr.msra.gmra.mxu1 %vm523_vm2, %v521_v57  ;;  %3710 = vmatprep.subr.mxu1 %v3983_v52  ;;  %v519_v59 = vpop.xlane.xlu0 %518 }
 0x108   : > { %3712 = vmatprep.mubr.msk.f32.mxu1 %vm3984_vm1, %v3983_v52  ;;  %v520_v61 = vmul.f32 0.00048828125, %v519_v59 }
 0x10a   : > { %3696 = vmatpush3.msk.msra.mxu0 %vm428_vm0, %v520_v61 }
 0x10b   : > { %3698 = vmatmul.mubr.msk.f32.vlgmr.msra.gmra.mxu0 %vm523_vm2, %v522_v62  ;;  %3705 = vmatprep.subr.mxu0 %v3983_v52 }
 0x10c   : > { %3707 = vmatprep.mubr.msk.f32.mxu0 %vm3984_vm1, %v3983_v52 }
 0x1c7   : > { %v672_v4 = vpop.f32.mrf.mxu1 }
 0x1c9   : > { %v3704_v6 = vpop.f32.mrf.mxu1 }
 0x1cb   : > { %v596_v8 = vpop.f32.mrf.mxu0 }
 0x1cc   : > { %v673_v14 = vadd.f32 %v672_v4, %v596_v8 }
 0x1cd   : > { %v3699_v17 = vpop.f32.mrf.mxu0 }
 0x1ce   : > { %v3561_v20 = vmul.f32 -1.442695, %v673_v14 }
 0x1d0   : > { %3787 = vpow2.f32 %v3561_v20 }
 0x1dd   : > { %v3788_v22 = vpop.eup %3787 }
 0x1de   : > { %v679_v24 = vadd.f32 1.0, %v3788_v22 }
 0x1e0   : > { %3789 = vrcp.f32 %v679_v24 }
 0x1ed   : > { %v3790_v25 = vpop.eup %3789 }
 0x1ee   : > { %691 = vperm.xlu1 %3769, %v3790_v25  }
 0x269   : > { %v692_v35 = vpop.permute.xlu1 %691 }
 0x26a   : > { %v694_v37 = vmul.f32 %v3562_v33, %v692_v35  ;;  %v695_v38 = vrot.slane %v692_v35, 4 }
 0x26c   : > { %v697_v41 = vmul.f32 %v3562_v33, %v695_v38  ;;  %3706 = vmatpush3.msk.msra.mxu0 %vm428_vm0, %v694_v37 }
 0x26d   : > { %3708 = vmatmul.mubr.msk.f32.vlgmr.msra.gmra.mxu0 %vm523_vm2, %v698_v39  ;;  %3567 = vmatprep.subr.msk.mxu0 %vm428_vm0, %v4249_v16 }
 0x26e   : > { %3711 = vmatpush3.msk.msra.mxu1 %vm428_vm0, %v697_v41  ;;  %3568 = vmatpush1.msk.msra.mxu0 %vm428_vm0, %v4231_v9 }
 0x26f   : > { %3713 = vmatmul.mubr.msk.f32.vlgmr.msra.gmra.mxu1 %vm523_vm2, %v775_v43  ;;  %3570 = vmatprep.subr.msk.mxu1 %vm428_vm0, %v4253_v18 }
 0x270   : > { %951 = vmatprep.mubr.f32.mxu0 %v3983_v52  ;;  %3571 = vmatpush1.msk.msra.mxu1 %vm428_vm0, %v4240_v12 }
 0x271   : > { %1022 = vmatprep.mubr.f32.mxu1 %v3983_v52  ;;  %3573 = vmatprep.subr.msk.mxu0 %vm428_vm0, %v4277_v30 }
 0x272   : > { %3576 = vmatprep.subr.msk.mxu1 %vm428_vm0, %v4299_v42 }
 0x32d   : > { %v771_v45 = vpop.f32.mrf.mxu0 }
 0x32f   : > { %v848_v47 = vpop.f32.mrf.mxu1  ;;  %v3709_v49 = vpop.f32.mrf.mxu0 }
 0x330   : > { %3569 = vmatmul.mubr.msk.f32.vlgmr.msra.gmra.mxu0 %vm523_vm2, %v848_v47  ;;  %3572 = vmatmul.mubr.msk.f32.vlgmr.msra.gmra.mxu1 %vm523_vm2, %v848_v47 }
 0x331   : > { %v3714_v50 = vpop.f32.mrf.mxu1  ;;  %3574 = vmatpush1.msk.msra.mxu0 %vm428_vm0, %v4262_v21  ;;  %1093 = vmatprep.mubr.f32.mxu0 %v3983_v52 }
 0x332   : > { %3577 = vmatpush1.msk.msra.mxu1 %vm428_vm0, %v4288_v34  ;;  %1164 = vmatprep.mubr.f32.mxu1 %v3983_v52 }
 0x333   : > { %3579 = vmatprep.subr.msk.mxu0 %vm428_vm0, %v4321_v54  ;;  %3582 = vmatprep.subr.msk.mxu1 %vm428_vm0, %v4343_v7 }
 0x334   : > { %3575 = vmatmul.mubr.msk.f32.vlgmr.msra.gmra.mxu0 %vm523_vm2, %v848_v47  ;;  %3578 = vmatmul.mubr.msk.f32.vlgmr.msra.gmra.mxu1 %vm523_vm2, %v848_v47 }
 0x335   : > { %3580 = vmatpush1.msk.msra.mxu0 %vm428_vm0, %v4310_v46  ;;  %1235 = vmatprep.mubr.f32.mxu0 %v3983_v52 }
 0x336   : > { %3583 = vmatpush1.msk.msra.mxu1 %vm428_vm0, %v4332_v58  ;;  %1306 = vmatprep.mubr.f32.mxu1 %v3983_v52 }
 0x337   : > { %3585 = vmatprep.subr.msk.mxu0 %vm428_vm0, %v4362_v27  ;;  %3588 = vmatprep.subr.msk.mxu1 %vm428_vm0, %v4375_v40 }
 0x338   : > { %3581 = vmatmul.mubr.msk.f32.vlgmr.msra.gmra.mxu0 %vm523_vm2, %v848_v47  ;;  %3584 = vmatmul.mubr.msk.f32.vlgmr.msra.gmra.mxu1 %vm523_vm2, %v848_v47 }
 0x339   : > { %3586 = vmatpush1.msk.msra.mxu0 %vm428_vm0, %v4354_v15  ;;  %1377 = vmatprep.mubr.f32.mxu0 %v3983_v52 }
 0x33a   : > { %3589 = vmatpush1.msk.msra.mxu1 %vm428_vm0, %v4369_v31  ;;  %1448 = vmatprep.mubr.f32.mxu1 %v3983_v52 }
 0x33b   : > { %3591 = vmatprep.subr.msk.mxu0 %vm428_vm0, %v4215_v2  ;;  %3594 = vmatprep.subr.msk.mxu1 %vm428_vm0, %v4219_v3 }
 0x33c   : > { %3587 = vmatmul.mubr.msk.f32.vlgmr.msra.gmra.mxu0 %vm523_vm2, %v848_v47  ;;  %3590 = vmatmul.mubr.msk.f32.vlgmr.msra.gmra.mxu1 %vm523_vm2, %v848_v47 }
 0x33d   : > { %3592 = vmatpush1.msk.msra.mxu0 %vm428_vm0, %v4208_v0  ;;  %1554 = vmatprep.mubr.f32.mxu0 %v3983_v52 }
 0x33e   : > { %3595 = vmatpush1.msk.msra.mxu1 %vm428_vm0, %v4211_v1  ;;  %1625 = vmatprep.mubr.f32.mxu1 %v3983_v52 }
 0x33f   : > { %3597 = vmatprep.subr.msk.mxu0 %vm428_vm0, %v4235_v10  ;;  %3600 = vmatprep.subr.msk.mxu1 %vm428_vm0, %v4257_v19 }
 0x340   : > { %3593 = vmatmul.mubr.msk.f32.vlgmr.msra.gmra.mxu0 %vm523_vm2, %v771_v45  ;;  %3596 = vmatmul.mubr.msk.f32.vlgmr.msra.gmra.mxu1 %vm523_vm2, %v771_v45 }
 0x341   : > { %3598 = vmatpush1.msk.msra.mxu0 %vm428_vm0, %v4224_v5  ;;  %1696 = vmatprep.mubr.f32.mxu0 %v3983_v52 }
 0x342   : > { %3601 = vmatpush1.msk.msra.mxu1 %vm428_vm0, %v4243_v13  ;;  %1767 = vmatprep.mubr.f32.mxu1 %v3983_v52 }
 0x343   : > { %3603 = vmatprep.subr.msk.mxu0 %vm428_vm0, %v4283_v32  ;;  %3606 = vmatprep.subr.msk.mxu1 %vm428_vm0, %v4305_v44 }
 0x344   : > { %3599 = vmatmul.mubr.msk.f32.vlgmr.msra.gmra.mxu0 %vm523_vm2, %v771_v45  ;;  %3602 = vmatmul.mubr.msk.f32.vlgmr.msra.gmra.mxu1 %vm523_vm2, %v771_v45 }
 0x345   : > { %3604 = vmatpush1.msk.msra.mxu0 %vm428_vm0, %v4267_v23  ;;  %1838 = vmatprep.mubr.f32.mxu0 %v3983_v52 }
 0x346   : > { %3607 = vmatpush1.msk.msra.mxu1 %vm428_vm0, %v4291_v36  ;;  %1909 = vmatprep.mubr.f32.mxu1 %v3983_v52 }
 0x347   : > { %3609 = vmatprep.subr.msk.mxu0 %vm428_vm0, %v4327_v56  ;;  %3612 = vmatprep.subr.msk.mxu1 %vm428_vm0, %v4349_v11 }
 0x348   : > { %3605 = vmatmul.mubr.msk.f32.vlgmr.msra.gmra.mxu0 %vm523_vm2, %v771_v45  ;;  %3608 = vmatmul.mubr.msk.f32.vlgmr.msra.gmra.mxu1 %vm523_vm2, %v771_v45 }
 0x349   : > { %3610 = vmatpush1.msk.msra.mxu0 %vm428_vm0, %v4313_v48  ;;  %1980 = vmatprep.mubr.f32.mxu0 %v3983_v52 }
 0x34a   : > { %3613 = vmatpush1.msk.msra.mxu1 %vm428_vm0, %v4335_v60  ;;  %2051 = vmatprep.mubr.f32.mxu1 %v3983_v52 }
 0x34b   : > { %3615 = vmatprep.subr.msk.mxu0 %vm428_vm0, %v4249_v16  ;;  %3618 = vmatprep.subr.msk.mxu1 %vm428_vm0, %v4253_v18 }
 0x34c   : > { %3611 = vmatmul.mubr.msk.f32.vlgmr.msra.gmra.mxu0 %vm523_vm2, %v771_v45  ;;  %3614 = vmatmul.mubr.msk.f32.vlgmr.msra.gmra.mxu1 %vm523_vm2, %v771_v45 }
 0x34d   : > { %3616 = vmatpush1.msk.msra.mxu0 %vm428_vm0, %v4231_v9  ;;  %2127 = vmatprep.mubr.f32.mxu0 %v3983_v52  ;;  %v2058_v9 = vld [vmem:[%s4761_s6] sm:$0x1] }
 0x34e   : > { %3619 = vmatpush1.msk.msra.mxu1 %vm428_vm0, %v4240_v12  ;;  %2198 = vmatprep.mubr.f32.mxu1 %v3983_v52 }
 0x34f   : > { %3621 = vmatprep.subr.msk.mxu0 %vm428_vm0, %v4277_v30  ;;  %3624 = vmatprep.subr.msk.mxu1 %vm428_vm0, %v4299_v42 }
 0x350   : > { %3617 = vmatmul.mubr.msk.f32.vlgmr.msra.gmra.mxu0 %vm523_vm2, %v2059_v51  ;;  %3620 = vmatmul.mubr.msk.f32.vlgmr.msra.gmra.mxu1 %vm523_vm2, %v2059_v51 }
 0x351   : > { %3622 = vmatpush1.msk.msra.mxu0 %vm428_vm0, %v4262_v21  ;;  %2269 = vmatprep.mubr.f32.mxu0 %v3983_v52 }
 0x352   : > { %3625 = vmatpush1.msk.msra.mxu1 %vm428_vm0, %v4288_v34  ;;  %2340 = vmatprep.mubr.f32.mxu1 %v3983_v52 }
 0x353   : > { %3627 = vmatprep.subr.msk.mxu0 %vm428_vm0, %v4321_v54  ;;  %3630 = vmatprep.subr.msk.mxu1 %vm428_vm0, %v4343_v7 }
 0x354   : > { %3623 = vmatmul.mubr.msk.f32.vlgmr.msra.gmra.mxu0 %vm523_vm2, %v2059_v51  ;;  %3626 = vmatmul.mubr.msk.f32.vlgmr.msra.gmra.mxu1 %vm523_vm2, %v2059_v51 }
 0x355   : > { %3628 = vmatpush1.msk.msra.mxu0 %vm428_vm0, %v4310_v46  ;;  %2411 = vmatprep.mubr.f32.mxu0 %v3983_v52 }
 0x356   : > { %3631 = vmatpush1.msk.msra.mxu1 %vm428_vm0, %v4332_v58  ;;  %2482 = vmatprep.mubr.f32.mxu1 %v3983_v52 }
 0x357   : > { %3633 = vmatprep.subr.msk.mxu0 %vm428_vm0, %v4362_v27  ;;  %3636 = vmatprep.subr.msk.mxu1 %vm428_vm0, %v4375_v40 }
 0x358   : > { %3629 = vmatmul.mubr.msk.f32.vlgmr.msra.gmra.mxu0 %vm523_vm2, %v2059_v51  ;;  %3632 = vmatmul.mubr.msk.f32.vlgmr.msra.gmra.mxu1 %vm523_vm2, %v2059_v51 }
 0x359   : > { %3634 = vmatpush1.msk.msra.mxu0 %vm428_vm0, %v4354_v15  ;;  %2553 = vmatprep.mubr.f32.mxu0 %v3983_v52 }
 0x35a   : > { %3637 = vmatpush1.msk.msra.mxu1 %vm428_vm0, %v4369_v31  ;;  %2624 = vmatprep.mubr.f32.mxu1 %v3983_v52 }
 0x35b   : > { %3639 = vmatprep.subr.msk.mxu0 %vm428_vm0, %v4215_v2  ;;  %3642 = vmatprep.subr.msk.mxu1 %vm428_vm0, %v4219_v3 }
 0x35c   : > { %3635 = vmatmul.mubr.msk.f32.vlgmr.msra.gmra.mxu0 %vm523_vm2, %v2059_v51  ;;  %3638 = vmatmul.mubr.msk.f32.vlgmr.msra.gmra.mxu1 %vm523_vm2, %v2059_v51 }
 0x35d   : > { %3640 = vmatpush1.msk.msra.mxu0 %vm428_vm0, %v4208_v0  ;;  %2698 = vmatprep.mubr.f32.mxu0 %v3983_v52 }
 0x35e   : > { %3643 = vmatpush1.msk.msra.mxu1 %vm428_vm0, %v4211_v1  ;;  %2769 = vmatprep.mubr.f32.mxu1 %v3983_v52 }
 0x35f   : > { %3645 = vmatprep.subr.msk.mxu0 %vm428_vm0, %v4235_v10  ;;  %3648 = vmatprep.subr.msk.mxu1 %vm428_vm0, %v4257_v19 }
 0x360   : > { %3641 = vmatmul.mubr.msk.f32.vlgmr.msra.gmra.mxu0 %vm523_vm2, %v2058_v9  ;;  %3644 = vmatmul.mubr.msk.f32.vlgmr.msra.gmra.mxu1 %vm523_vm2, %v2058_v9 }
 0x361   : > { %3646 = vmatpush1.msk.msra.mxu0 %vm428_vm0, %v4224_v5  ;;  %2840 = vmatprep.mubr.f32.mxu0 %v3983_v52 }
 0x362   : > { %3649 = vmatpush1.msk.msra.mxu1 %vm428_vm0, %v4243_v13  ;;  %2911 = vmatprep.mubr.f32.mxu1 %v3983_v52 }
 0x363   : > { %3651 = vmatprep.subr.msk.mxu0 %vm428_vm0, %v4283_v32  ;;  %3654 = vmatprep.subr.msk.mxu1 %vm428_vm0, %v4305_v44 }
 0x364   : > { %3647 = vmatmul.mubr.msk.f32.vlgmr.msra.gmra.mxu0 %vm523_vm2, %v2058_v9  ;;  %3650 = vmatmul.mubr.msk.f32.vlgmr.msra.gmra.mxu1 %vm523_vm2, %v2058_v9 }
 0x365   : > { %3652 = vmatpush1.msk.msra.mxu0 %vm428_vm0, %v4267_v23  ;;  %2982 = vmatprep.mubr.f32.mxu0 %v3983_v52 }
 0x366   : > { %3655 = vmatpush1.msk.msra.mxu1 %vm428_vm0, %v4291_v36  ;;  %3053 = vmatprep.mubr.f32.mxu1 %v3983_v52 }
 0x367   : > { %3657 = vmatprep.subr.msk.mxu0 %vm428_vm0, %v4327_v56  ;;  %3660 = vmatprep.subr.msk.mxu1 %vm428_vm0, %v4349_v11 }
 0x368   : > { %3653 = vmatmul.mubr.msk.f32.vlgmr.msra.gmra.mxu0 %vm523_vm2, %v2058_v9  ;;  %3656 = vmatmul.mubr.msk.f32.vlgmr.msra.gmra.mxu1 %vm523_vm2, %v2058_v9 }
 0x369   : > { %3658 = vmatpush1.msk.msra.mxu0 %vm428_vm0, %v4313_v48  ;;  %3124 = vmatprep.mubr.f32.mxu0 %v3983_v52 }
 0x36a   : > { %3661 = vmatpush1.msk.msra.mxu1 %vm428_vm0, %v4335_v60  ;;  %3195 = vmatprep.mubr.f32.mxu1 %v3983_v52 }
 0x36c   : > { %3659 = vmatmul.mubr.msk.f32.vlgmr.msra.gmra.mxu0 %vm523_vm2, %v2058_v9  ;;  %3662 = vmatmul.mubr.msk.f32.vlgmr.msra.gmra.mxu1 %vm523_vm2, %v2058_v9 }
 0x3f0   : > { %v953_v0 = vpop.f32.mrf.mxu0  ;;  %v1024_v1 = vpop.f32.mrf.mxu1 }
 0x3f2   : > { %v955_v2 = vpop.f32.mrf.mxu0  ;;  %v1026_v3 = vpop.f32.mrf.mxu1 }
 0x3f4   : > { %v1095_v5 = vpop.f32.mrf.mxu0  ;;  %v1166_v10 = vpop.f32.mrf.mxu1 }
 0x3f6   : > { %v1097_v12 = vpop.f32.mrf.mxu0  ;;  %v1168_v13 = vpop.f32.mrf.mxu1 }
 0x3f8   : > { %v1237_v16 = vpop.f32.mrf.mxu0  ;;  %v1308_v18 = vpop.f32.mrf.mxu1 }
 0x3fa   : > { %v1239_v19 = vpop.f32.mrf.mxu0  ;;  %v1310_v21 = vpop.f32.mrf.mxu1 }
 0x3fc   : > { %v1379_v23 = vpop.f32.mrf.mxu0  ;;  %v1450_v30 = vpop.f32.mrf.mxu1 }
 0x3fe   : > { %v1381_v32 = vpop.f32.mrf.mxu0  ;;  %v1452_v34 = vpop.f32.mrf.mxu1 }
 0x400   : > { %v1556_v36 = vpop.f32.mrf.mxu0  ;;  %v1627_v42 = vpop.f32.mrf.mxu1 }
 0x401   : > { %v4617_v44 = vadd.f32 %v1556_v36, %v953_v0  ;;  %v4619_v46 = vadd.f32 %v1627_v42, %v1024_v1 }
 0x402   : > { %v1558_v48 = vpop.f32.mrf.mxu0  ;;  %v1629_v54 = vpop.f32.mrf.mxu1 }
 0x403   : > { %v4621_v56 = vadd.f32 %v1558_v48, %v955_v2  ;;  %v4623_v58 = vadd.f32 %v1629_v54, %v1026_v3  ;;  %v4653_v2 = vstv %s3202_s26 }
 0x404   : > { %v1698_v60 = vpop.f32.mrf.mxu0  ;;  %v1769_v7 = vpop.f32.mrf.mxu1 }
 0x405   : > { %v4625_v11 = vadd.f32 %v1698_v60, %v1095_v5  ;;  %v4627_v15 = vadd.f32 %v1769_v7, %v1166_v10 }
 0x406   : > { %v1700_v27 = vpop.f32.mrf.mxu0  ;;  %v1771_v31 = vpop.f32.mrf.mxu1 }
 0x407   : > { %v4629_v40 = vadd.f32 %v1700_v27, %v1097_v12  ;;  %v4631_v52 = vadd.f32 %v1771_v31, %v1168_v13 }
 0x408   : > { %v1840_v53 = vpop.f32.mrf.mxu0  ;;  %v1911_v55 = vpop.f32.mrf.mxu1 }
 0x409   : > { %v4633_v57 = vadd.f32 %v1840_v53, %v1237_v16  ;;  %v4635_v59 = vadd.f32 %v1911_v55, %v1308_v18 }
 0x40a   : > { %v1842_v61 = vpop.f32.mrf.mxu0  ;;  %v1913_v62 = vpop.f32.mrf.mxu1 }
 0x40b   : > { %v4637_v63 = vadd.f32 %v1842_v61, %v1239_v19  ;;  %v4639_v4 = vadd.f32 %v1913_v62, %v1310_v21 }
 0x40c   : > { %v1982_v6 = vpop.f32.mrf.mxu0  ;;  %v2053_v8 = vpop.f32.mrf.mxu1 }
 0x40d   : > { %v4641_v14 = vadd.f32 %v1982_v6, %v1379_v23  ;;  %v4643_v17 = vadd.f32 %v2053_v8, %v1450_v30 }
 0x40e   : > { %v1984_v20 = vpop.f32.mrf.mxu0  ;;  %v2055_v22 = vpop.f32.mrf.mxu1 }
 0x40f   : > { %v4645_v24 = vadd.f32 %v1984_v20, %v1381_v32  ;;  %v4647_v25 = vadd.f32 %v2055_v22, %v1452_v34 }
 0x410   : > { %v2129_v26 = vpop.f32.mrf.mxu0  ;;  %v2200_v29 = vpop.f32.mrf.mxu1 }
 0x412   : > { %v2131_v33 = vpop.f32.mrf.mxu0  ;;  %v2202_v35 = vpop.f32.mrf.mxu1 }
 0x414   : > { %v2271_v37 = vpop.f32.mrf.mxu0  ;;  %v2342_v38 = vpop.f32.mrf.mxu1 }
 0x416   : > { %v2273_v39 = vpop.f32.mrf.mxu0  ;;  %v2344_v41 = vpop.f32.mrf.mxu1 }
 0x418   : > { %v2413_v43 = vpop.f32.mrf.mxu0  ;;  %v2484_v45 = vpop.f32.mrf.mxu1 }
 0x41a   : > { %v2415_v47 = vpop.f32.mrf.mxu0  ;;  %v2486_v49 = vpop.f32.mrf.mxu1 }
 0x41c   : > { %v2555_v50 = vpop.f32.mrf.mxu0  ;;  %v2626_v51 = vpop.f32.mrf.mxu1 }
 0x41e   : > { %v4649_v9 = vpop.f32.mrf.mxu0  ;;  %v4651_v0 = vpop.f32.mrf.mxu1 }
 0x420   : > { %v2700_v1 = vpop.f32.mrf.mxu0  ;;  %v2771_v3 = vpop.f32.mrf.mxu1 }
 0x421   : > { %v2701_v5 = vadd.f32 %v2700_v1, %v2129_v26  ;;  %v2772_v10 = vadd.f32 %v2771_v3, %v2200_v29 }
 0x422   : > { %v2702_v12 = vpop.f32.mrf.mxu0  ;;  %v2773_v13 = vpop.f32.mrf.mxu1 }
 0x423   : > { %v3204_v16 = vadd.f32 %v4653_v2, %v2701_v5  ;;  %v3206_v18 = vadd.f32 %v4653_v2, %v2772_v10  ;;  %v2703_v19 = vadd.f32 %v2702_v12, %v2131_v33  ;;  %v2774_v21 = vadd.f32 %v2773_v13, %v2202_v35 }
 0x424   : > { %v2842_v23 = vpop.f32.mrf.mxu0  ;;  %v2913_v30 = vpop.f32.mrf.mxu1 }
 0x425   : > { %v3663_v32 = vmul.f32 -1.442695, %v3204_v16  ;;  %v3665_v34 = vmul.f32 -1.442695, %v3206_v18  ;;  %v3205_v36 = vadd.f32 %v4653_v2, %v2703_v19  ;;  %v3207_v42 = vadd.f32 %v4653_v2, %v2774_v21 }
 0x426   : > { %v2843_v48 = vadd.f32 %v2842_v23, %v2271_v37  ;;  %v2914_v54 = vadd.f32 %v2913_v30, %v2342_v38  ;;  %v2844_v60 = vpop.f32.mrf.mxu0  ;;  %v2915_v7 = vpop.f32.mrf.mxu1 }
 0x427   : > { %3791 = vpow2.f32 %v3663_v32  ;;  %v3664_v27 = vmul.f32 -1.442695, %v3205_v36  ;;  %v3666_v31 = vmul.f32 -1.442695, %v3207_v42  ;;  %v2845_v53 = vadd.f32 %v2844_v60, %v2273_v39 }
 0x428   : > { %3793 = vpow2.f32 %v3665_v34  ;;  %v3208_v55 = vadd.f32 %v4653_v2, %v2843_v48  ;;  %v3210_v61 = vadd.f32 %v4653_v2, %v2914_v54  ;;  %v2916_v62 = vadd.f32 %v2915_v7, %v2344_v41  ;;  %v2984_v6 = vpop.f32.mrf.mxu0  ;;  %v3055_v8 = vpop.f32.mrf.mxu1 }
 0x429   : > { %3795 = vpow2.f32 %v3664_v27  ;;  %v3209_v20 = vadd.f32 %v4653_v2, %v2845_v53  ;;  %v2985_v22 = vadd.f32 %v2984_v6, %v2413_v43  ;;  %v3056_v26 = vadd.f32 %v3055_v8, %v2484_v45 }
 0x42a   : > { %3797 = vpow2.f32 %v3666_v31  ;;  %v3667_v29 = vmul.f32 -1.442695, %v3208_v55  ;;  %v3669_v33 = vmul.f32 -1.442695, %v3210_v61  ;;  %v3211_v35 = vadd.f32 %v4653_v2, %v2916_v62  ;;  %v2986_v37 = vpop.f32.mrf.mxu0  ;;  %v3057_v38 = vpop.f32.mrf.mxu1 }
 0x42b   : > { %v3668_v39 = vmul.f32 -1.442695, %v3209_v20  ;;  %v3212_v1 = vadd.f32 %v4653_v2, %v2985_v22  ;;  %v3214_v3 = vadd.f32 %v4653_v2, %v3056_v26  ;;  %v2987_v41 = vadd.f32 %v2986_v37, %v2415_v47 }
 0x42c   : > { %3799 = vpow2.f32 %v3667_v29  ;;  %v3670_v5 = vmul.f32 -1.442695, %v3211_v35  ;;  %v3058_v10 = vadd.f32 %v3057_v38, %v2486_v49  ;;  %v3126_v12 = vpop.f32.mrf.mxu0  ;;  %v3197_v13 = vpop.f32.mrf.mxu1 }
 0x42d   : > { %3801 = vpow2.f32 %v3669_v33  ;;  %v3671_v43 = vmul.f32 -1.442695, %v3212_v1  ;;  %v3673_v45 = vmul.f32 -1.442695, %v3214_v3  ;;  %v3213_v16 = vadd.f32 %v4653_v2, %v2987_v41 }
 0x42e   : > { %3803 = vpow2.f32 %v3668_v39  ;;  %v3215_v18 = vadd.f32 %v4653_v2, %v3058_v10  ;;  %v3127_v19 = vadd.f32 %v3126_v12, %v2555_v50  ;;  %v3198_v21 = vadd.f32 %v3197_v13, %v2626_v51  ;;  %v3128_v23 = vpop.f32.mrf.mxu0  ;;  %v3199_v30 = vpop.f32.mrf.mxu1 }
 0x42f   : > { %3805 = vpow2.f32 %v3670_v5  ;;  %v3672_v32 = vmul.f32 -1.442695, %v3213_v16  ;;  %v3129_v47 = vadd.f32 %v3128_v23, %v4649_v9  ;;  %v3200_v49 = vadd.f32 %v3199_v30, %v4651_v0 }
 0x430   : > { %3807 = vpow2.f32 %v3671_v43  ;;  %v3674_v34 = vmul.f32 -1.442695, %v3215_v18  ;;  %v3216_v36 = vadd.f32 %v4653_v2, %v3127_v19  ;;  %v3218_v42 = vadd.f32 %v4653_v2, %v3198_v21 }
 0x431   : > { %3809 = vpow2.f32 %v3673_v45  ;;  %v3217_v48 = vadd.f32 %v4653_v2, %v3129_v47  ;;  %v3219_v60 = vadd.f32 %v4653_v2, %v3200_v49  ;;  %v4674_v10 = vsub.s32 0, %v4405_v28 }
 0x432   : > { %3811 = vpow2.f32 %v3672_v32  ;;  %v3675_v50 = vmul.f32 -1.442695, %v3216_v36  ;;  %v3677_v51 = vmul.f32 -1.442695, %v3218_v42 }
 0x433   : > { %3813 = vpow2.f32 %v3674_v34  ;;  %v3676_v54 = vmul.f32 -1.442695, %v3217_v48  ;;  %v3678_v61 = vmul.f32 -1.442695, %v3219_v60 }
 0x434   : > { %v3792_v7 = vpop.eup %3791  ;;  %3815 = vpow2.f32 %v3675_v50 }
 0x435   : > { %v3794_v9 = vpop.eup %3793  ;;  %v3268_v0 = vadd.f32 1.0, %v3792_v7  ;;  %3817 = vpow2.f32 %v3677_v51 }
 0x436   : > { %v3796_v27 = vpop.eup %3795  ;;  %v3270_v31 = vadd.f32 1.0, %v3794_v9  ;;  %3819 = vpow2.f32 %v3676_v54 }
 0x437   : > { %v3798_v53 = vpop.eup %3797  ;;  %3821 = vrcp.f32 %v3268_v0  ;;  %v3269_v55 = vadd.f32 1.0, %v3796_v27 }
 0x438   : > { %3823 = vrcp.f32 %v3270_v31  ;;  %v3271_v62 = vadd.f32 1.0, %v3798_v53 }
 0x439   : > { %v3800_v6 = vpop.eup %3799  ;;  %3825 = vrcp.f32 %v3269_v55 }
 0x43a   : > { %v3802_v8 = vpop.eup %3801  ;;  %3827 = vrcp.f32 %v3271_v62  ;;  %v3272_v20 = vadd.f32 1.0, %v3800_v6 }
 0x43b   : > { %v3804_v2 = vpop.eup %3803  ;;  %v3274_v22 = vadd.f32 1.0, %v3802_v8  ;;  %3829 = vpow2.f32 %v3678_v61 }
 0x43c   : > { %v3806_v26 = vpop.eup %3805  ;;  %3831 = vrcp.f32 %v3272_v20  ;;  %v3273_v29 = vadd.f32 1.0, %v3804_v2 }
 0x43d   : > { %v3808_v33 = vpop.eup %3807  ;;  %3833 = vrcp.f32 %v3274_v22  ;;  %v3275_v35 = vadd.f32 1.0, %v3806_v26 }
 0x43e   : > { %v3810_v37 = vpop.eup %3809  ;;  %3835 = vrcp.f32 %v3273_v29  ;;  %v3276_v38 = vadd.f32 1.0, %v3808_v33 }
 0x43f   : > { %v3812_v39 = vpop.eup %3811  ;;  %3837 = vrcp.f32 %v3275_v35  ;;  %v3278_v1 = vadd.f32 1.0, %v3810_v37 }
 0x440   : > { %v3814_v3 = vpop.eup %3813  ;;  %3839 = vrcp.f32 %v3276_v38  ;;  %v3277_v41 = vadd.f32 1.0, %v3812_v39 }
 0x441   : > { %v3816_v5 = vpop.eup %3815  ;;  %3841 = vrcp.f32 %v3278_v1  ;;  %v3279_v12 = vadd.f32 1.0, %v3814_v3 }
 0x442   : > { %v3818_v13 = vpop.eup %3817  ;;  %3843 = vrcp.f32 %v3277_v41  ;;  %v3280_v43 = vadd.f32 1.0, %v3816_v5 }
 0x443   : > { %v3820_v45 = vpop.eup %3819  ;;  %3845 = vrcp.f32 %v3279_v12  ;;  %v3282_v16 = vadd.f32 1.0, %v3818_v13 }
 0x444   : > { %v3822_v18 = vpop.eup %3821  ;;  %3847 = vrcp.f32 %v3280_v43  ;;  %v3281_v19 = vadd.f32 1.0, %v3820_v45 }
 0x445   : > { %v3824_v21 = vpop.eup %3823  ;;  %v3319_v23 = vrot.slane %v3822_v18, %v4674_v10  ;;  %3849 = vrcp.f32 %v3282_v16 }
 0x446   : > { %v3826_v30 = vpop.eup %3825  ;;  %v3327_v32 = vrot.slane %v3824_v21, %v4674_v10  ;;  %3851 = vrcp.f32 %v3281_v19 }
 0x447   : > { %v3828_v28 = vpop.eup %3827  ;;  %v3380_v47 = vmul.f32 %v3319_v23, %v4617_v44  ;;  %v3323_v49 = vrot.slane %v3826_v30, %v4674_v10 }
 0x448   : > { %v3830_v34 = vpop.eup %3829  ;;  %v3382_v36 = vmul.f32 %v3327_v32, %v4619_v46  ;;  %v3331_v42 = vrot.slane %v3828_v28, %v4674_v10 }
 0x449   : > { %v3832_v48 = vpop.eup %3831  ;;  %v3381_v50 = vmul.f32 %v3323_v49, %v4621_v56  ;;  %v3283_v51 = vadd.f32 1.0, %v3830_v34 }
 0x44a   : > { %v3834_v54 = vpop.eup %3833  ;;  %v3383_v60 = vmul.f32 %v3331_v42, %v4623_v58  ;;  %v3335_v7 = vrot.slane %v3832_v48, %v4674_v10 }
 0x44b   : > { %v3836_v9 = vpop.eup %3835  ;;  %v3412_v0 = vcombine.low %v3380_v47, %v3381_v50  ;;  %v3343_v44 = vrot.slane %v3834_v54, %v4674_v10  ;;  %3853 = vrcp.f32 %v3283_v51 }
 0x44c   : > { %v3838_v27 = vpop.eup %3837  ;;  %v3413_v31 = vcombine.low %v3382_v36, %v3383_v60  ;;  %v3384_v46 = vmul.f32 %v3335_v7, %v4625_v11  ;;  %v3339_v53 = vrot.slane %v3836_v9, %v4674_v10 }
 0x44d   : > { %v3840_v55 = vpop.eup %3839  ;;  %3428 = vst [vmem:[%s4689_s21] sm:$0xff] %v3412_v0  ;;  %v3386_v56 = vmul.f32 %v3343_v44, %v4627_v15  ;;  %v3347_v58 = vrot.slane %v3838_v27, %v4674_v10 }
 0x44e   : > { %v3842_v61 = vpop.eup %3841  ;;  %3429 = vst [vmem:[%s4689_s21 + $0x8] sm:$0xff] %v3413_v31  ;;  %v3385_v62 = vmul.f32 %v3339_v53, %v4629_v40  ;;  %v3351_v6 = vrot.slane %v3840_v55, %v4674_v10 }
 0x44f   : > { %v3844_v11 = vpop.eup %3843  ;;  %v3387_v8 = vmul.f32 %v3347_v58, %v4631_v52  ;;  %v3359_v20 = vrot.slane %v3842_v61, %v4674_v10 }
 0x450   : > { %v3846_v2 = vpop.eup %3845  ;;  %v3414_v22 = vcombine.low %v3384_v46, %v3385_v62  ;;  %v3388_v26 = vmul.f32 %v3351_v6, %v4633_v57  ;;  %v3355_v15 = vrot.slane %v3844_v11, %v4674_v10 }
 0x451   : > { %v3848_v29 = vpop.eup %3847  ;;  %v3415_v33 = vcombine.low %v3386_v56, %v3387_v8  ;;  %v3390_v35 = vmul.f32 %v3359_v20, %v4635_v59  ;;  %v3363_v40 = vrot.slane %v3846_v2, %v4674_v10 }
 0x452   : > { %v3850_v37 = vpop.eup %3849  ;;  %3430 = vst [vmem:[%s4689_s21 + $0x10] sm:$0xff] %v3414_v22  ;;  %v3389_v52 = vmul.f32 %v3355_v15, %v4637_v63  ;;  %v3367_v38 = vrot.slane %v3848_v29, %v4674_v10 }
 0x453   : > { %v3852_v39 = vpop.eup %3851  ;;  %3431 = vst [vmem:[%s4689_s21 + $0x18] sm:$0xff] %v3415_v33  ;;  %v3391_v57 = vmul.f32 %v3363_v40, %v4639_v4  ;;  %v3375_v1 = vrot.slane %v3850_v37, %v4674_v10 }
 0x454   : > { %v3416_v3 = vcombine.low %v3388_v26, %v3389_v52  ;;  %v3392_v59 = vmul.f32 %v3367_v38, %v4641_v14  ;;  %v3371_v41 = vrot.slane %v3852_v39, %v4674_v10 }
 0x455   : > { %v3417_v5 = vcombine.low %v3390_v35, %v3391_v57  ;;  %v3394_v63 = vmul.f32 %v3375_v1, %v4643_v17 }
 0x456   : > { %3432 = vst [vmem:[%s4689_s21 + $0x20] sm:$0xff] %v3416_v3  ;;  %v3393_v12 = vmul.f32 %v3371_v41, %v4645_v24 }
 0x457   : > { %3433 = vst [vmem:[%s4689_s21 + $0x28] sm:$0xff] %v3417_v5 }
 0x458   : > { %v3854_v13 = vpop.eup %3853  ;;  %v3418_v43 = vcombine.low %v3392_v59, %v3393_v12 }
 0x459   : > { %v3379_v4 = vrot.slane %v3854_v13, %v4674_v10 }
 0x45a   : > { %3434 = vst [vmem:[%s4689_s21 + $0x30] sm:$0xff] %v3418_v43 }
 0x45b   : > { %v3395_v14 = vmul.f32 %v3379_v4, %v4647_v25 }
 0x45d   : > { %v3419_v45 = vcombine.low %v3394_v63, %v3395_v14 }
 0x45f   : > { %3435 = vst [vmem:[%s4689_s21 + $0x38] sm:$0xff] %v3419_v45 }
 0x460   : > { %3924 = shalt.err (!%p3921_p5)
}
 0x461   : > { %s3925_s25 = scalar_lea.hbm %s3449_s18, 1024  ;;  %s3929_s15 = scalar_lea.hbm %s4764_s9, 2048 }
 0x462   : > { %p3926_p9 = scmp.ne.s32.totalorder %s3449_s18, %s3925_s25  ;;  %p3930_p12 = scmp.lt.s32.totalorder %s3449_s18, %s4764_s9 }
 0x463   : > { %p3931_p1 = scmp.lt.s32.totalorder %s3929_s15, %s3925_s25 }
 0x464   : > { %p3927_p0 = pnand %p3926_p9, %p4784_p3 }
 0x465   : > { %p3932_p6 = por %p3931_p1, %p3930_p12 }
 0x466   : > { %p3928_p11 = pneg %p3927_p0 }
 0x468   : > { %p3933_p13 = pnand %p3932_p6, %p3928_p11 }
 0x46a   : > { %3936 = shalt.err (!%p3933_p13)
}
 0x46b   : > { %3719 = dma.vmem_to_hbm [thread:$0]  (%p4784_p3), %s3452_s28, 1024, %s3449_s18, %s3437_s30  }
 0x46c PF: > { %s3463_s17 = sand.u32 1, %s3967_s11   ;;  %p4785_p7 = scmp.ne.s32.totalorder %s4774_s23, 0 }
 0x46d   : > { %p4786_p8 = scmp.ge.s32.totalorder %s3979_s14, 2  ;;  %s3464_s27 = scalar_lea.sflag [#allocation5], %s3463_s17 }
 0x46f   : > { %p3729_p10 = pnand %p4786_p8, %p4785_p7 }
 0x471   : > { %p3730_p2 = pneg %p3729_p10 }
 0x473   : > { %3962 = dma.done.wait (%p3730_p2), %s3464_s27, 1024  }
 0x474   : > { %3964 = vsyncadd (%p3730_p2), %s3464_s27, 4294966272  ;;  %s4787_s29 = sld [smem:[#allocation12_spill]]  ;;  %p26_p4 = scmp.ge.s32.totalorder %s4065_s16, 4  }
 0x475   : > { %s4788_s11 = smov %s3971_s12  ;;  %s4789_s12 = smov %s3975_s13 }
 0x476   : > { %s4791_s14 = smov %s4065_s16  ;;  %28 = sbr.rel (!%p26_p4) target bundleno = 10 (0xa), region = 114 }
 0x47a   : > { %s4790_s13 = smov %s4787_s29 }
 0x47b   :  { %3469 = vsyncpa [#allocation4], 1 }
 0x47c   :  { %3471 = vsyncpa [#allocation4 + $0x1], 1 }
 0x47d   :  { %3472 = vsyncpa [#allocation7], 1 }
 0x47e   :  { %3474 = vsyncpa [#allocation7 + $0x1], 1 }
 0x47f   :  { %3475 = vsyncpa [#allocation5], 1 }
 0x480   :  { %3477 = vsyncpa [#allocation5 + $0x1], 1 }

</bundles_post_ra>
